<compile_context>
chip_gen: v6e
topology: v6e:2x2x1
jax: 0.10.0
libtpu: 0.0.40
codegen_flags: <defaults>
</compile_context>

<pallas_src>
from functools import partial

import jax
import jax.numpy as jnp
from jax.experimental import pallas as pl
from jax.experimental.pallas import tpu as pltpu


def _round_up(x, m):
    return ((x + m - 1) // m) * m


def linear_kernel(x_ref, w_ref, b_ref, o_ref):
    # x_ref: (TB, IN)  w_ref: (OUT, IN)  b_ref: (1, OUT)  o_ref: (TB, OUT)
    # out = x @ W^T expressed by contracting the last axis of both operands,
    # so no transpose is materialized anywhere.
    acc = jax.lax.dot_general(
        x_ref[...], w_ref[...],
        dimension_numbers=(((1,), (1,)), ((), ())),
        preferred_element_type=jnp.float32,
    )
    o_ref[...] = (acc + b_ref[...]).astype(o_ref.dtype)


@partial(jax.jit, static_argnames=("block_b", "force_pallas"))
def linear_forward(x, weight, bias, *, block_b=8192, force_pallas=False):
    """Pallas equivalent of nn.Linear forward: x @ weight.T + bias.

    x: (B, IN), weight: (OUT, IN), bias: (OUT,)  ->  (B, OUT)
    """
    B, IN = x.shape
    OUT, IN_w = weight.shape
    assert IN == IN_w and bias.shape == (OUT,)

    # Fast path: for KB-scale problems XLA's fused GEMV beats any kernel
    # dispatch; the Pallas path only pays off for large batches.
    if not force_pallas and B * (IN + OUT) * x.dtype.itemsize < (1 << 20):
        return x @ weight.T + bias

    # Batch tile selection (rows per grid step).
    if B <= block_b:
        tb = B                                   # one grid step (single-TC optimum)
    else:
        # >=2 tiles so a dual-TensorCore chip (v7x) can split the "parallel"
        # grid axis; 128-row alignment keeps blocks sublane-aligned.
        tb = _round_up(min(block_b, pl.cdiv(B, 2)), 128)
    grid = (pl.cdiv(B, tb),)

    b2 = bias.reshape(1, OUT)

    # (8,128)-tile-padded VMEM footprint: double-buffered streamed blocks plus
    # the resident weight/bias tiles.
    def padded(r, c):
        return _round_up(r, 8) * _round_up(c, 128) * x.dtype.itemsize

    vmem_bytes = (2 * (padded(tb, IN) + padded(tb, OUT))
                  + padded(OUT, IN) + padded(1, OUT))
    vmem_limit = int(min(max(vmem_bytes + (8 << 20), 32 << 20), 128 << 20))

    return pl.pallas_call(
        linear_kernel,
        out_shape=jax.ShapeDtypeStruct((B, OUT), x.dtype),
        grid=grid,
        in_specs=[
            pl.BlockSpec((tb, IN), lambda i: (i, 0)),    # x batch tile (streamed)
            pl.BlockSpec((OUT, IN), lambda i: (0, 0)),   # weight: VMEM-resident
            pl.BlockSpec((1, OUT), lambda i: (0, 0)),    # bias:   VMEM-resident
        ],
        out_specs=pl.BlockSpec((tb, OUT), lambda i: (i, 0)),
        compiler_params=pltpu.CompilerParams(
            dimension_semantics=("parallel",),           # v7x: 2 TCs split batch tiles
            vmem_limit_bytes=vmem_limit,
        ),
    )(x, weight, b2)


if __name__ == "__main__":
    input_size = 5    # fixed by the PyTorch module
    output_size = 2

    key = jax.random.PRNGKey(0)
    kx, kw, kb, kx2 = jax.random.split(key, 4)

    # PyTorch-style uniform init bounds for nn.Linear.
    bound = 1.0 / (input_size ** 0.5)
    weight = jax.random.uniform(
        kw, (output_size, input_size), jnp.float32, -bound, bound)
    bias = jax.random.uniform(kb, (output_size,), jnp.float32, -bound, bound)

    # 1) Pallas path, multi-tile grid (block_b=128 -> two 128-row batch tiles).
    batch = 256
    x = jax.random.normal(kx, (batch, input_size), jnp.float32)
    out = linear_forward(x, weight, bias, block_b=128, force_pallas=True)
    out = jax.block_until_ready(out)
    ref = x @ weight.T + bias
    assert out.shape == (batch, output_size)
    assert jnp.allclose(out, ref, atol=1e-5, rtol=1e-5), float(
        jnp.max(jnp.abs(out - ref)))

    # 2) Pallas path, partial trailing tile (300 rows -> tiles of 128/128/44).
    x2 = jax.random.normal(kx2, (300, input_size), jnp.float32)
    out2 = jax.block_until_ready(
        linear_forward(x2, weight, bias, block_b=128, force_pallas=True))
    ref2 = x2 @ weight.T + bias
    assert jnp.allclose(out2, ref2, atol=1e-5, rtol=1e-5)

    # 3) Default call (small problem -> XLA fast path, jit-fused).
    out3 = jax.block_until_ready(linear_forward(x, weight, bias))
    assert jnp.allclose(out3, ref, atol=1e-5, rtol=1e-5)

    # Mirrors the PyTorch module's print of input/output sizes.
    print("\tIn Model: input size", x.shape, "output size", out.shape)
    print("KERNEL_OK")
</pallas_src>

<mosaic_0001>
module attributes {stable_mosaic.version = 11 : i64} {
  func.func @linear_kernel(%arg0: i32, %arg1: memref<128x5xf32, #tpu.memory_space<vmem>>, %arg2: memref<2x5xf32, #tpu.memory_space<vmem>>, %arg3: memref<1x2xf32, #tpu.memory_space<vmem>>, %arg4: memref<128x2xf32, #tpu.memory_space<vmem>>) attributes {dimension_semantics = [#tpu.dimension_semantics<parallel>], iteration_bounds = array<i64: 2>, scalar_prefetch = 0 : i64, scratch_operands = 0 : i64, tpu.core_type = #tpu.core_type<tc>, window_params = [{transform_indices = @transform_0, window_bounds = array<i64: 128, 5>}, {pipeline_mode = #tpu.pipeline_mode<synchronous>, transform_indices = @transform_1, window_bounds = array<i64: 2, 5>}, {pipeline_mode = #tpu.pipeline_mode<synchronous>, transform_indices = @transform_2, window_bounds = array<i64: 1, 2>}, {transform_indices = @transform_3, window_bounds = array<i64: 128, 2>}]} {
    %c0 = arith.constant 0 : index
    %c0_0 = arith.constant 0 : index
    %0 = vector.load %arg1[%c0, %c0_0] : memref<128x5xf32, #tpu.memory_space<vmem>>, vector<128x5xf32>
    %c0_1 = arith.constant 0 : index
    %c0_2 = arith.constant 0 : index
    %1 = vector.load %arg2[%c0_1, %c0_2] : memref<2x5xf32, #tpu.memory_space<vmem>>, vector<2x5xf32>
    %cst = arith.constant dense<0.000000e+00> : vector<128x2xf32>
    %2 = tpu.matmul %0, %1, %cst {dimension_numbers = #tpu.dot_dimension_numbers<[1], [1], [0], [0], [0, 0, 1, 0], [], []>} : vector<128x5xf32>, vector<2x5xf32>, vector<128x2xf32> -> vector<128x2xf32>
    %c0_3 = arith.constant 0 : index
    %c0_4 = arith.constant 0 : index
    %3 = vector.load %arg3[%c0_3, %c0_4] : memref<1x2xf32, #tpu.memory_space<vmem>>, vector<1x2xf32>
    %4 = vector.broadcast %3 : vector<1x2xf32> to vector<128x2xf32>
    %5 = arith.addf %2, %4 : vector<128x2xf32>
    %c0_5 = arith.constant 0 : index
    %c0_6 = arith.constant 0 : index
    %6 = vector.load %arg4[%c0_5, %c0_6] : memref<128x2xf32, #tpu.memory_space<vmem>>, vector<128x2xf32>
    tpu.vector_store %arg4[%c0_5, %c0_6], %5 {strides = array<i32>} : memref<128x2xf32, #tpu.memory_space<vmem>>, vector<128x2xf32>,
    return
  }
  func.func @transform_0(%arg0: i32) -> (i32, i32) {
    %c0_i32 = arith.constant 0 : i32
    %c0_i32_0 = arith.constant 0 : i32
    return %arg0, %c0_i32 : i32, i32
  }
  func.func @transform_1(%arg0: i32) -> (i32, i32) {
    %c0_i32 = arith.constant 0 : i32
    %c0_i32_0 = arith.constant 0 : i32
    %c0_i32_1 = arith.constant 0 : i32
    return %c0_i32, %c0_i32_0 : i32, i32
  }
  func.func @transform_2(%arg0: i32) -> (i32, i32) {
    %c0_i32 = arith.constant 0 : i32
    %c0_i32_0 = arith.constant 0 : i32
    %c0_i32_1 = arith.constant 0 : i32
    return %c0_i32, %c0_i32_0 : i32, i32
  }
  func.func @transform_3(%arg0: i32) -> (i32, i32) {
    %c0_i32 = arith.constant 0 : i32
    %c0_i32_0 = arith.constant 0 : i32
    return %arg0, %c0_i32 : i32, i32
  }
}

</mosaic_0001>

<bundles_post_ra>
// kernel: linear_forward.1
= control target key start
LH: loop header
LB: loop body
LE: loop exit
PB: predicated region body
PF: predicated region fallthrough
CT: control target
= control target key end

     0   :  { %s578_s12 = smov 0   ;;  %s662_s0 = inlined_call_operand.vmem [shape: f32[256,5], index: 0, kind: input, shape index: {}]   ;;  %s663_s1 = inlined_call_operand.vmem [shape: f32[2,5], index: 1, kind: input, shape index: {}]   ;;  %s664_s2 = inlined_call_operand.vmem [shape: f32[1,2], index: 2, kind: input, shape index: {}]   ;;  %s665_s3 = inlined_call_operand.vmem [shape: f32[256,2], index: 3, kind: output, shape index: {}]  }
   0x1 LB: > { %s468_s13 = sadd.s32 4294967295, %s556_s12   ;;  %p472_p0 = scmp.ge.s32.totalorder %s556_s12, 1  ;;  %s556_s12 = sphi %s578_s12, %s13_s12  }
   0x2   : > { %p138_p1 = scmp.lt.s32.totalorder %s556_s12, 3 }
   0x4   : > { %p139_p2 = pnand %p472_p0, %p138_p1 }
   0x5   : > { %s473_s16 = sshll.u32 (!%p139_p2), %s468_s13, 4 }
   0x6   : > { %142 = sbr.rel (%p139_p2) target bundleno = 227 (0xe3), region = 32  ;;  %p163_p3 = scmp.lt.s32.totalorder (!%p139_p2), %s473_s16, 31 }
   0xb   : > { %v190_v0 = vld [vmem:[%s663_s1] sm:$0x3]  ;;  %vm198_vm0 = vcmask 39936   ;;  %s667_s16 = smov (!%p163_p3, %s473_s16), 31  ;;  %vm395_vm1 = vcmask 15360  }
   0xc   : > { %514 = vmatprep.subr.msk.mxu0 %vm198_vm0, %v190_v0  ;;  %540 = vmatprep.subr.msk.mxu1 %vm198_vm0, %v190_v0  ;;  %s474_s17 = sshll.u32 %s667_s16, 3  ;;  %v477_v17 = vld [vmem:[%s664_s2] ss:$0 sm:$0xff] }
   0xd   : > { %515 = vmatpush3.xpose.msk.msra.mxu0 %vm198_vm0, %v190_v0  ;;  %541 = vmatpush3.xpose.msk.msra.mxu1 %vm198_vm0, %v190_v0  ;;  %s166_s20 = scalar_lea.vmem %s662_s0, %s474_s17  ;;  %s625_s25 = scalar_lea.vmem %s665_s3, %s474_s17 }
   0xe   : > { %v174_v1 = vld [vmem:[%s166_s20] sm:$0xff]  ;;  %v175_v3 = vld [vmem:[%s166_s20 + $0x8] sm:$0xff]  ;;  %v176_v5 = vld [vmem:[%s166_s20 + $0x10] sm:$0xff] }
   0xf   : > { %v182_v2 = vld [vmem:[%s166_s20 + $0x40] sm:$0xff]  ;;  %516 = vmatprep.mubr.msk.f32.mxu0 %vm198_vm0, %v174_v1  ;;  %v183_v4 = vld [vmem:[%s166_s20 + $0x48] sm:$0xff]  ;;  %v184_v6 = vld [vmem:[%s166_s20 + $0x50] sm:$0xff] }
  0x10   : > { %528 = vmatprep.mubr.msk.f32.mxu1 %vm198_vm0, %v182_v2  ;;  %517 = vmatmul.mubr.msk.f32.vlgmr.msra.gmra.mxu0 %vm198_vm0, %v175_v3  ;;  %v177_v7 = vld [vmem:[%s166_s20 + $0x18] sm:$0xff]  ;;  %v178_v9 = vld [vmem:[%s166_s20 + $0x20] sm:$0xff]  ;;  %v179_v11 = vld [vmem:[%s166_s20 + $0x28] sm:$0xff] }
  0x11   : > { %529 = vmatmul.mubr.msk.f32.vlgmr.msra.gmra.mxu1 %vm198_vm0, %v183_v4  ;;  %519 = vmatprep.mubr.msk.f32.mxu0 %vm198_vm0, %v176_v5  ;;  %v185_v8 = vld [vmem:[%s166_s20 + $0x58] sm:$0xff]  ;;  %v186_v10 = vld [vmem:[%s166_s20 + $0x60] sm:$0xff]  ;;  %v187_v12 = vld [vmem:[%s166_s20 + $0x68] sm:$0xff] }
  0x12   : > { %531 = vmatprep.mubr.msk.f32.mxu1 %vm198_vm0, %v184_v6  ;;  %v180_v13 = vld [vmem:[%s166_s20 + $0x30] sm:$0xff]  ;;  %v181_v15 = vld [vmem:[%s166_s20 + $0x38] sm:$0xff] }
  0x13   : > { %v188_v14 = vld [vmem:[%s166_s20 + $0x70] sm:$0xff]  ;;  %v189_v16 = vld [vmem:[%s166_s20 + $0x78] sm:$0xff] }
  0x14   : > { %520 = vmatmul.mubr.msk.f32.gmra.mxu0 %vm198_vm0, %v177_v7 }
  0x15   : > { %532 = vmatmul.mubr.msk.f32.gmra.mxu1 %vm198_vm0, %v185_v8  ;;  %522 = vmatprep.mubr.msk.f32.mxu0 %vm198_vm0, %v178_v9 }
  0x16   : > { %534 = vmatprep.mubr.msk.f32.mxu1 %vm198_vm0, %v186_v10 }
  0x18   : > { %523 = vmatmul.mubr.msk.f32.gmra.mxu0 %vm198_vm0, %v179_v11 }
  0x19   : > { %535 = vmatmul.mubr.msk.f32.gmra.mxu1 %vm198_vm0, %v187_v12  ;;  %525 = vmatprep.mubr.msk.f32.mxu0 %vm198_vm0, %v180_v13 }
  0x1a   : > { %537 = vmatprep.mubr.msk.f32.mxu1 %vm198_vm0, %v188_v14 }
  0x1c   : > { %526 = vmatmul.mubr.msk.f32.gmra.mxu0 %vm198_vm0, %v181_v15 }
  0x1d   : > { %538 = vmatmul.mubr.msk.f32.gmra.mxu1 %vm198_vm0, %v189_v16 }
  0xd0   : > { %v518_v18 = vpop.f32.mrf.mxu0 }
  0xd1   : > { %v530_v19 = vpop.f32.mrf.mxu1  ;;  %v322_v20 = vadd.f32 %v518_v18, %v477_v17 }
  0xd2   : > { %v362_v21 = vadd.f32 %v530_v19, %v477_v17  ;;  %v316_v22 = vpop.f32.mrf.mxu0 }
  0xd3   : > { %v356_v23 = vpop.f32.mrf.mxu1  ;;  %397 = vst.msk [vmem:[%s625_s25 + $0x8] sm:$0xff] %vm395_vm1, %v322_v20  ;;  %v317_v24 = vadd.f32 %v477_v17, %v316_v22 }
  0xd4   : > { %405 = vst.msk [vmem:[%s625_s25 + $0x48] sm:$0xff] %vm395_vm1, %v362_v21  ;;  %v357_v25 = vadd.f32 %v477_v17, %v356_v23  ;;  %v521_v26 = vpop.f32.mrf.mxu0 }
  0xd5   : > { %v533_v27 = vpop.f32.mrf.mxu1  ;;  %396 = vst.msk [vmem:[%s625_s25] sm:$0xff] %vm395_vm1, %v317_v24  ;;  %v332_v28 = vadd.f32 %v521_v26, %v477_v17 }
  0xd6   : > { %404 = vst.msk [vmem:[%s625_s25 + $0x40] sm:$0xff] %vm395_vm1, %v357_v25  ;;  %v372_v29 = vadd.f32 %v533_v27, %v477_v17  ;;  %v326_v30 = vpop.f32.mrf.mxu0 }
  0xd7   : > { %v366_v31 = vpop.f32.mrf.mxu1  ;;  %399 = vst.msk [vmem:[%s625_s25 + $0x18] sm:$0xff] %vm395_vm1, %v332_v28  ;;  %v327_v32 = vadd.f32 %v477_v17, %v326_v30 }
  0xd8   : > { %407 = vst.msk [vmem:[%s625_s25 + $0x58] sm:$0xff] %vm395_vm1, %v372_v29  ;;  %v367_v33 = vadd.f32 %v477_v17, %v366_v31  ;;  %v524_v34 = vpop.f32.mrf.mxu0 }
  0xd9   : > { %v536_v35 = vpop.f32.mrf.mxu1  ;;  %398 = vst.msk [vmem:[%s625_s25 + $0x10] sm:$0xff] %vm395_vm1, %v327_v32  ;;  %v342_v36 = vadd.f32 %v524_v34, %v477_v17 }
  0xda   : > { %406 = vst.msk [vmem:[%s625_s25 + $0x50] sm:$0xff] %vm395_vm1, %v367_v33  ;;  %v382_v37 = vadd.f32 %v536_v35, %v477_v17  ;;  %v336_v38 = vpop.f32.mrf.mxu0 }
  0xdb   : > { %v376_v39 = vpop.f32.mrf.mxu1  ;;  %401 = vst.msk [vmem:[%s625_s25 + $0x28] sm:$0xff] %vm395_vm1, %v342_v36  ;;  %v337_v40 = vadd.f32 %v477_v17, %v336_v38 }
  0xdc   : > { %409 = vst.msk [vmem:[%s625_s25 + $0x68] sm:$0xff] %vm395_vm1, %v382_v37  ;;  %v377_v41 = vadd.f32 %v477_v17, %v376_v39  ;;  %v527_v42 = vpop.f32.mrf.mxu0 }
  0xdd   : > { %v539_v43 = vpop.f32.mrf.mxu1  ;;  %400 = vst.msk [vmem:[%s625_s25 + $0x20] sm:$0xff] %vm395_vm1, %v337_v40  ;;  %v352_v44 = vadd.f32 %v527_v42, %v477_v17 }
  0xde   : > { %408 = vst.msk [vmem:[%s625_s25 + $0x60] sm:$0xff] %vm395_vm1, %v377_v41  ;;  %v392_v45 = vadd.f32 %v539_v43, %v477_v17  ;;  %v346_v46 = vpop.f32.mrf.mxu0 }
  0xdf   : > { %v386_v47 = vpop.f32.mrf.mxu1  ;;  %403 = vst.msk [vmem:[%s625_s25 + $0x38] sm:$0xff] %vm395_vm1, %v352_v44  ;;  %v347_v48 = vadd.f32 %v477_v17, %v346_v46 }
  0xe0   : > { %411 = vst.msk [vmem:[%s625_s25 + $0x78] sm:$0xff] %vm395_vm1, %v392_v45  ;;  %v387_v49 = vadd.f32 %v477_v17, %v386_v47 }
  0xe1   : > { %402 = vst.msk [vmem:[%s625_s25 + $0x30] sm:$0xff] %vm395_vm1, %v347_v48 }
  0xe2   : > { %410 = vst.msk [vmem:[%s625_s25 + $0x70] sm:$0xff] %vm395_vm1, %v387_v49 }
  0xe3 PF: > { %s13_s12 = sadd.s32 1, %s556_s12  }
  0xe4   : > { %p10_p4 = scmp.ge.s32.totalorder %s13_s12, 4  }
  0xe6   :  { %12 = sbr.rel (!%p10_p4) target bundleno = 1 (0x1), region = 62 }

</bundles_post_ra>
